<compile_context>
chip_gen: v7x
topology: tpu7x:2x2x1
jax: 0.10.0
libtpu: 0.0.40
codegen_flags: <defaults>
</compile_context>

<pallas_src>
import jax
import jax.numpy as jnp
from jax.experimental import pallas as pl
from jax.experimental.pallas import tpu as pltpu

HIDDEN = 256


# ----------------------------------------------------------------------------
# Pallas kernel: full twin-Q critic forward (fused heads, bf16 MXU operands)
# ----------------------------------------------------------------------------
def _critic_kernel(state_ref, action_ref, w1s_ref, w1a_ref, w25_ref, misc_ref,
                   q_ref):
    f32 = jnp.float32
    bf16 = jnp.bfloat16

    # misc slab rows: 0 -> [b1|b4], 1 -> [b2|b5], 2 -> [w3|w6], 3 -> [b3,b6,0..]
    b1 = misc_ref[0:1, :]                                    # (1, 512)

    # ---- fused layer 1 (both heads): bf16 acts x bf16 weights, f32 accumulate --
    s16 = state_ref[...].astype(bf16)
    a16 = action_ref[...].astype(bf16)
    h_cat = (jnp.dot(s16, w1s_ref[...], preferred_element_type=f32)
             + jnp.dot(a16, w1a_ref[...], preferred_element_type=f32)
             + b1)                                           # (B, 512) f32
    h_cat = jnp.maximum(h_cat, 0.0)

    h = h_cat[:, :HIDDEN].astype(bf16)                       # Q1 branch (B, 256)
    g = h_cat[:, HIDDEN:].astype(bf16)                       # Q2 branch (B, 256)

    # ---- per-head layer 2 ------------------------------------------------------
    b2 = misc_ref[1:2, :HIDDEN]                              # (1, 256)
    b5 = misc_ref[1:2, HIDDEN:]                              # (1, 256)
    h2 = jnp.maximum(
        jnp.dot(h, w25_ref[0], preferred_element_type=f32) + b2, 0.0)   # (B,256)
    g2 = jnp.maximum(
        jnp.dot(g, w25_ref[1], preferred_element_type=f32) + b5, 0.0)   # (B,256)

    # ---- output layer as VPU multiply + lane reduction (XLU), no MXU pass ------
    w3 = misc_ref[2:3, :HIDDEN]                              # (1, 256) f32
    w6 = misc_ref[2:3, HIDDEN:]                              # (1, 256) f32
    q1 = jnp.sum(h2 * w3, axis=-1, keepdims=True)            # (B, 1)
    q2 = jnp.sum(g2 * w6, axis=-1, keepdims=True)            # (B, 1)

    bout = misc_ref[3:4, 0:2]                                # (1, 2) = [b3, b6]
    q_ref[...] = jnp.concatenate([q1, q2], axis=1) + bout    # one (B, 2) store


# ----------------------------------------------------------------------------
# Parameter packing: original per-layer params -> fused kernel layout
# ----------------------------------------------------------------------------
def pack_critic_params(p, state_dim, weight_dtype=jnp.bfloat16):
    """Fuse the twin heads; bf16 hidden weights; 1 f32 misc slab for the rest."""
    w14 = jnp.concatenate([p["w1"], p["w4"]], axis=1)        # (sa_dim, 512)
    w1s = w14[:state_dim].astype(weight_dtype)               # (state_dim, 512)
    w1a = w14[state_dim:].astype(weight_dtype)               # (action_dim, 512)
    w25 = jnp.stack([p["w2"], p["w5"]], axis=0).astype(weight_dtype)  # (2,256,256)

    misc = jnp.zeros((4, 2 * HIDDEN), jnp.float32)
    misc = misc.at[0, :].set(jnp.concatenate([p["b1"][0], p["b4"][0]]))
    misc = misc.at[1, :].set(jnp.concatenate([p["b2"][0], p["b5"][0]]))
    misc = misc.at[2, :].set(jnp.concatenate([p["w3"][:, 0], p["w6"][:, 0]]))
    misc = misc.at[3, 0].set(p["b3"][0, 0])
    misc = misc.at[3, 1].set(p["b6"][0, 0])

    return dict(w1s=w1s, w1a=w1a, w25=w25, misc=misc)


# ----------------------------------------------------------------------------
# Wrapper
# ----------------------------------------------------------------------------
def critic_forward(state, action, packed, *, batch_block=128):
    """Returns (q1, q2), each (batch, 1), matching Critic.forward."""
    state = state.astype(jnp.float32)
    action = action.astype(jnp.float32)
    B, S = state.shape
    A = action.shape[1]

    args = (state, action, packed["w1s"], packed["w1a"], packed["w25"],
            packed["misc"])

    sa_dim = S + A
    flops = 2 * B * (sa_dim * 2 * HIDDEN + 2 * HIDDEN * HIDDEN) + 4 * B * HIDDEN
    bytes_accessed = sum(int(a.size) * a.dtype.itemsize for a in args) + B * 2 * 4
    cost = pl.CostEstimate(flops=flops, transcendentals=0,
                           bytes_accessed=bytes_accessed)
    out_shape = jax.ShapeDtypeStruct((B, 2), jnp.float32)

    if B >= batch_block and B % batch_block == 0:
        # Training-sized batches: parallel batch grid (uses both v7x TensorCores);
        # weight index_maps return block 0 so weights stay VMEM-resident.
        bm = batch_block
        in_specs = [
            pl.BlockSpec((bm, S), lambda i: (i, 0)),
            pl.BlockSpec((bm, A), lambda i: (i, 0)),
            pl.BlockSpec(packed["w1s"].shape, lambda i: (0, 0)),
            pl.BlockSpec(packed["w1a"].shape, lambda i: (0, 0)),
            pl.BlockSpec(packed["w25"].shape, lambda i: (0, 0, 0)),
            pl.BlockSpec(packed["misc"].shape, lambda i: (0, 0)),
        ]
        q = pl.pallas_call(
            _critic_kernel,
            out_shape=out_shape,
            grid=(B // bm,),
            in_specs=in_specs,
            out_specs=pl.BlockSpec((bm, 2), lambda i: (i, 0)),
            compiler_params=pltpu.CompilerParams(
                dimension_semantics=("parallel",)),
            cost_estimate=cost,
        )(*args)
    else:
        # Small batches: grid-less, everything whole-array-resident in VMEM.
        vmem = pl.BlockSpec(memory_space=pltpu.MemorySpace.VMEM)
        q = pl.pallas_call(
            _critic_kernel,
            out_shape=out_shape,
            in_specs=[vmem] * len(args),
            out_specs=vmem,
            cost_estimate=cost,
        )(*args)

    return q[:, 0:1], q[:, 1:2]


# ----------------------------------------------------------------------------
# Deterministic parameter init (PyTorch Linear default: U(-1/sqrt(fan_in), ..))
# ----------------------------------------------------------------------------
def init_critic_params(key, state_dim, action_dim, hidden=HIDDEN):
    sa_dim = state_dim + action_dim
    dims = [(sa_dim, hidden), (hidden, hidden), (hidden, 1),   # Q1: l1,l2,l3
            (sa_dim, hidden), (hidden, hidden), (hidden, 1)]   # Q2: l4,l5,l6
    params = {}
    keys = jax.random.split(key, 2 * len(dims))
    for i, (fan_in, fan_out) in enumerate(dims):
        bound = 1.0 / jnp.sqrt(jnp.float32(fan_in))
        w = jax.random.uniform(keys[2 * i], (fan_in, fan_out),
                               minval=-bound, maxval=bound, dtype=jnp.float32)
        b = jax.random.uniform(keys[2 * i + 1], (1, fan_out),
                               minval=-bound, maxval=bound, dtype=jnp.float32)
        params[f"w{i + 1}"] = w
        params[f"b{i + 1}"] = b
    return params


# ----------------------------------------------------------------------------
# Pure-JAX reference mirroring the PyTorch module, with the same bf16 rounding
# of hidden-layer weights AND the activations fed to the bf16 matmuls that the
# kernel uses (f32 accumulation), so only accumulation order differs.
# ----------------------------------------------------------------------------
def critic_forward_ref(state, action, p, weight_dtype=jnp.bfloat16):
    f32 = jnp.float32
    q = lambda x: x.astype(weight_dtype)
    sa = jnp.concatenate([state, action], axis=1)
    h = jax.nn.relu(jnp.dot(q(sa), q(p["w1"]), preferred_element_type=f32) + p["b1"])
    h = jax.nn.relu(jnp.dot(q(h), q(p["w2"]), preferred_element_type=f32) + p["b2"])
    q1 = h @ p["w3"] + p["b3"]
    g = jax.nn.relu(jnp.dot(q(sa), q(p["w4"]), preferred_element_type=f32) + p["b4"])
    g = jax.nn.relu(jnp.dot(q(g), q(p["w5"]), preferred_element_type=f32) + p["b5"])
    q2 = g @ p["w6"] + p["b6"]
    return q1, q2


if __name__ == "__main__":
    key = jax.random.PRNGKey(0)
    k_param, _ = jax.random.split(key)

    state_dim, action_dim = 17, 6            # small HalfCheetah-like dims
    params = init_critic_params(k_param, state_dim, action_dim)
    packed = pack_critic_params(params, state_dim)

    # batch=8 exercises the grid-less path; batch=256 exercises the parallel
    # batch-grid path (v7x dual-TensorCore form).
    for batch in (8, 256):
        kb = jax.random.fold_in(key, batch)
        k_state, k_action = jax.random.split(kb)
        state = jax.random.normal(k_state, (batch, state_dim), dtype=jnp.float32)
        action = jax.random.normal(k_action, (batch, action_dim), dtype=jnp.float32)

        q1, q2 = critic_forward(state, action, packed)
        jax.block_until_ready((q1, q2))

        q1_ref, q2_ref = critic_forward_ref(state, action, params)
        assert q1.shape == (batch, 1) and q2.shape == (batch, 1)
        assert jnp.allclose(q1, q1_ref, atol=2e-3, rtol=2e-3), \
            float(jnp.max(jnp.abs(q1 - q1_ref)))
        assert jnp.allclose(q2, q2_ref, atol=2e-3, rtol=2e-3), \
            float(jnp.max(jnp.abs(q2 - q2_ref)))

    print("KERNEL_OK")
</pallas_src>

<mosaic_0001>
module attributes {stable_mosaic.version = 11 : i64} {
  func.func @_critic_kernel(%arg0: memref<8x17xf32, #tpu.memory_space<vmem>>, %arg1: memref<8x6xf32, #tpu.memory_space<vmem>>, %arg2: memref<17x512xbf16, #tpu.memory_space<vmem>>, %arg3: memref<6x512xbf16, #tpu.memory_space<vmem>>, %arg4: memref<2x256x256xbf16, #tpu.memory_space<vmem>>, %arg5: memref<4x512xf32, #tpu.memory_space<vmem>>, %arg6: memref<8x2xf32, #tpu.memory_space<vmem>>) attributes {dimension_semantics = [], scalar_prefetch = 0 : i64, scratch_operands = 0 : i64, tpu.core_type = #tpu.core_type<tc>} {
    %c0 = arith.constant 0 : index
    %c0_0 = arith.constant 0 : index
    %0 = vector.load %arg5[%c0, %c0_0] : memref<4x512xf32, #tpu.memory_space<vmem>>, vector<1x512xf32>
    %c0_1 = arith.constant 0 : index
    %c0_2 = arith.constant 0 : index
    %1 = vector.load %arg0[%c0_1, %c0_2] : memref<8x17xf32, #tpu.memory_space<vmem>>, vector<8x17xf32>
    %2 = arith.truncf %1 : vector<8x17xf32> to vector<8x17xbf16>
    %c0_3 = arith.constant 0 : index
    %c0_4 = arith.constant 0 : index
    %3 = vector.load %arg1[%c0_3, %c0_4] : memref<8x6xf32, #tpu.memory_space<vmem>>, vector<8x6xf32>
    %4 = arith.truncf %3 : vector<8x6xf32> to vector<8x6xbf16>
    %c0_5 = arith.constant 0 : index
    %c0_6 = arith.constant 0 : index
    %5 = vector.load %arg2[%c0_5, %c0_6] : memref<17x512xbf16, #tpu.memory_space<vmem>>, vector<17x512xbf16>
    %cst = arith.constant dense<0.000000e+00> : vector<8x512xf32>
    %6 = tpu.matmul %2, %5, %cst {dimension_numbers = #tpu.dot_dimension_numbers<[1], [0], [0], [1], [0, 0, 1, 1], [], []>} : vector<8x17xbf16>, vector<17x512xbf16>, vector<8x512xf32> -> vector<8x512xf32>
    %c0_7 = arith.constant 0 : index
    %c0_8 = arith.constant 0 : index
    %7 = vector.load %arg3[%c0_7, %c0_8] : memref<6x512xbf16, #tpu.memory_space<vmem>>, vector<6x512xbf16>
    %cst_9 = arith.constant dense<0.000000e+00> : vector<8x512xf32>
    %8 = tpu.matmul %4, %7, %cst_9 {dimension_numbers = #tpu.dot_dimension_numbers<[1], [0], [0], [1], [0, 0, 1, 1], [], []>} : vector<8x6xbf16>, vector<6x512xbf16>, vector<8x512xf32> -> vector<8x512xf32>
    %9 = arith.addf %6, %8 : vector<8x512xf32>
    %10 = vector.broadcast %0 : vector<1x512xf32> to vector<8x512xf32>
    %11 = arith.addf %9, %10 : vector<8x512xf32>
    %cst_10 = arith.constant 0.000000e+00 : f32
    %12 = vector.broadcast %cst_10 : f32 to vector<8x512xf32>
    %13 = arith.maximumf %11, %12 : vector<8x512xf32>
    %14 = vector.extract_strided_slice %13 {offsets = [0, 0], sizes = [8, 256], strides = [1, 1]} : vector<8x512xf32> to vector<8x256xf32>
    %15 = arith.truncf %14 : vector<8x256xf32> to vector<8x256xbf16>
    %16 = vector.extract_strided_slice %13 {offsets = [0, 256], sizes = [8, 256], strides = [1, 1]} : vector<8x512xf32> to vector<8x256xf32>
    %17 = arith.truncf %16 : vector<8x256xf32> to vector<8x256xbf16>
    %c1 = arith.constant 1 : index
    %c0_11 = arith.constant 0 : index
    %18 = vector.load %arg5[%c1, %c0_11] : memref<4x512xf32, #tpu.memory_space<vmem>>, vector<1x256xf32>
    %c1_12 = arith.constant 1 : index
    %c256 = arith.constant 256 : index
    %19 = vector.load %arg5[%c1_12, %c256] : memref<4x512xf32, #tpu.memory_space<vmem>>, vector<1x256xf32>
    %c0_13 = arith.constant 0 : index
    %c0_14 = arith.constant 0 : index
    %c0_15 = arith.constant 0 : index
    %20 = vector.load %arg4[%c0_13, %c0_14, %c0_15] : memref<2x256x256xbf16, #tpu.memory_space<vmem>>, vector<1x256x256xbf16>
    %21 = vector.shape_cast %20 : vector<1x256x256xbf16> to vector<256x256xbf16>
    %cst_16 = arith.constant dense<0.000000e+00> : vector<8x256xf32>
    %22 = tpu.matmul %15, %21, %cst_16 {dimension_numbers = #tpu.dot_dimension_numbers<[1], [0], [0], [1], [0, 0, 1, 1], [], []>} : vector<8x256xbf16>, vector<256x256xbf16>, vector<8x256xf32> -> vector<8x256xf32>
    %23 = vector.broadcast %18 : vector<1x256xf32> to vector<8x256xf32>
    %24 = arith.addf %22, %23 : vector<8x256xf32>
    %cst_17 = arith.constant 0.000000e+00 : f32
    %25 = vector.broadcast %cst_17 : f32 to vector<8x256xf32>
    %26 = arith.maximumf %24, %25 : vector<8x256xf32>
    %c1_18 = arith.constant 1 : index
    %c0_19 = arith.constant 0 : index
    %c0_20 = arith.constant 0 : index
    %27 = vector.load %arg4[%c1_18, %c0_19, %c0_20] : memref<2x256x256xbf16, #tpu.memory_space<vmem>>, vector<1x256x256xbf16>
    %28 = vector.shape_cast %27 : vector<1x256x256xbf16> to vector<256x256xbf16>
    %cst_21 = arith.constant dense<0.000000e+00> : vector<8x256xf32>
    %29 = tpu.matmul %17, %28, %cst_21 {dimension_numbers = #tpu.dot_dimension_numbers<[1], [0], [0], [1], [0, 0, 1, 1], [], []>} : vector<8x256xbf16>, vector<256x256xbf16>, vector<8x256xf32> -> vector<8x256xf32>
    %30 = vector.broadcast %19 : vector<1x256xf32> to vector<8x256xf32>
    %31 = arith.addf %29, %30 : vector<8x256xf32>
    %cst_22 = arith.constant 0.000000e+00 : f32
    %32 = vector.broadcast %cst_22 : f32 to vector<8x256xf32>
    %33 = arith.maximumf %31, %32 : vector<8x256xf32>
    %c2 = arith.constant 2 : index
    %c0_23 = arith.constant 0 : index
    %34 = vector.load %arg5[%c2, %c0_23] : memref<4x512xf32, #tpu.memory_space<vmem>>, vector<1x256xf32>
    %c2_24 = arith.constant 2 : index
    %c256_25 = arith.constant 256 : index
    %35 = vector.load %arg5[%c2_24, %c256_25] : memref<4x512xf32, #tpu.memory_space<vmem>>, vector<1x256xf32>
    %36 = vector.broadcast %34 : vector<1x256xf32> to vector<8x256xf32>
    %37 = arith.mulf %26, %36 : vector<8x256xf32>
    %cst_26 = arith.constant dense<0.000000e+00> : vector<8xf32>
    %38 = vector.multi_reduction <add>, %37, %cst_26 [1] : vector<8x256xf32> to vector<8xf32>
    %39 = vector.shape_cast %38 : vector<8xf32> to vector<8x1xf32>
    %40 = vector.broadcast %35 : vector<1x256xf32> to vector<8x256xf32>
    %41 = arith.mulf %33, %40 : vector<8x256xf32>
    %cst_27 = arith.constant dense<0.000000e+00> : vector<8xf32>
    %42 = vector.multi_reduction <add>, %41, %cst_27 [1] : vector<8x256xf32> to vector<8xf32>
    %43 = vector.shape_cast %42 : vector<8xf32> to vector<8x1xf32>
    %c3 = arith.constant 3 : index
    %c0_28 = arith.constant 0 : index
    %44 = vector.load %arg5[%c3, %c0_28] : memref<4x512xf32, #tpu.memory_space<vmem>>, vector<1x2xf32>
    %45 = tpu.concatenate %39, %43 in 1 : vector<8x1xf32>, vector<8x1xf32> -> vector<8x2xf32>
    %46 = vector.broadcast %44 : vector<1x2xf32> to vector<8x2xf32>
    %47 = arith.addf %45, %46 : vector<8x2xf32>
    %c0_29 = arith.constant 0 : index
    %c0_30 = arith.constant 0 : index
    %48 = vector.load %arg6[%c0_29, %c0_30] : memref<8x2xf32, #tpu.memory_space<vmem>>, vector<8x2xf32>
    tpu.vector_store %arg6[%c0_29, %c0_30], %47 {strides = array<i32>} : memref<8x2xf32, #tpu.memory_space<vmem>>, vector<8x2xf32>,
    return
  }
}

</mosaic_0001>

<bundles_post_ra>
// kernel: tpu_custom_call.1
= control target key start
LH: loop header
LB: loop body
LE: loop exit
PB: predicated region body
PF: predicated region fallthrough
CT: control target
= control target key end

     0   :  { %11 = vsyncpa [#allocation3], 0  ;;  %s1394_s0 = inlined_call_operand.hbm [shape: f32[8,17], index: 0, kind: input, shape index: {}]   ;;  %s1395_s1 = inlined_call_operand.hbm [shape: f32[8,6], index: 1, kind: input, shape index: {}]   ;;  %s1396_s2 = inlined_call_operand.hbm [shape: bf16[17,512], index: 2, kind: input, shape index: {}]   ;;  %s1397_s3 = inlined_call_operand.hbm [shape: bf16[6,512], index: 3, kind: input, shape index: {}]   ;;  %s1398_s4 = inlined_call_operand.hbm [shape: bf16[2,256,256], index: 4, kind: input, shape index: {}]   ;;  %s1399_s5 = inlined_call_operand.vmem [shape: f32[4,512], index: 5, kind: input, shape index: {}]   ;;  %s1400_s6 = inlined_call_operand.vmem [shape: f32[8,2], index: 6, kind: output, shape index: {}]  }
   0x1   :  { %12 = vsyncpa [#allocation5], 0 }
   0x2   :  { %13 = vsyncpa [#allocation8], 0  ;;  %s1245_s21 = smov [#allocation4]   ;;  %s1246_s23 = smov [#allocation7]  }
   0x3   :  { %s30_s22 = sshll.u32 %s1245_s21, 4  ;;  %s52_s24 = sshll.u32 %s1246_s23, 4  ;;  %s31_s22 = int_to_ptr.vmem [resolvable:$true] %s30_s22  ;;  %s53_s24 = int_to_ptr.vmem [resolvable:$true] %s52_s24 }
   0x4   :  { %s1129_s27 = scalar_lea.hbm %s1395_s1, 128 }
   0x5   :  { %p1130_p0 = scmp.ne.s32.totalorder %s1395_s1, %s1129_s27  ;;  %p1133_p1 = scmp.lt.u32.totalorder %s1129_s27, %s1395_s1 }
   0x7   :  { %p1135_p2 = pnand %p1133_p1, %p1130_p0 }
   0x9   :  { %1138 = shalt.err (!%p1135_p2)
}
   0xa   :  { %s1139_s8 = scalar_lea.vmem %s31_s22, 128  ;;  %p1144_p4 = scmp.lt.s32.totalorder %s31_s22, %s31_s22 }
   0xb   :  { %p1140_p3 = scmp.ne.s32.totalorder %s31_s22, %s1139_s8  ;;  %p1145_p5 = scmp.lt.s32.totalorder %s1139_s8, %s1139_s8 }
   0xd   :  { %p1146_p6 = por %p1145_p5, %p1144_p4 }
   0xf   :  { %p1147_p7 = pnand %p1146_p6, %p1140_p3 }
  0x11   :  { %1150 = shalt.err (!%p1147_p7)
}
  0x12   :  { %33 = dma.hbm_to_vmem [thread:$0]  %s1395_s1, 128, %s31_s22, [#allocation5]  }
  0x13   :  { %s1151_s13 = scalar_lea.hbm %s1397_s3, 256 }
  0x14   :  { %p1152_p8 = scmp.ne.s32.totalorder %s1397_s3, %s1151_s13  ;;  %p1155_p9 = scmp.lt.u32.totalorder %s1151_s13, %s1397_s3 }
  0x16   :  { %p1157_p10 = pnand %p1155_p9, %p1152_p8 }
  0x18   :  { %1160 = shalt.err (!%p1157_p10)
}
  0x19   :  { %s1161_s18 = scalar_lea.vmem %s53_s24, 256  ;;  %p1166_p12 = scmp.lt.s32.totalorder %s53_s24, %s53_s24 }
  0x1a   :  { %p1162_p11 = scmp.ne.s32.totalorder %s53_s24, %s1161_s18  ;;  %p1167_p13 = scmp.lt.s32.totalorder %s1161_s18, %s1161_s18 }
  0x1c   :  { %p1168_p0 = por %p1167_p13, %p1166_p12 }
  0x1e   :  { %p1169_p1 = pnand %p1168_p0, %p1162_p11 }
  0x20   :  { %1172 = shalt.err (!%p1169_p1)
}
  0x21   :  { %55 = dma.hbm_to_vmem [thread:$0]  %s1397_s3, 256, %s53_s24, [#allocation8]  }
  0x22   :  { %s1247_s20 = smov [#allocation2]   ;;  %s1248_s22 = smov [#allocation6]  }
  0x23   :  { %s20_s21 = sshll.u32 %s1247_s20, 4  ;;  %s39_s23 = sshll.u32 %s1248_s22, 4  ;;  %s21_s21 = int_to_ptr.vmem [resolvable:$true] %s20_s21  ;;  %s1314_s23 = int_to_ptr.vmem [resolvable:$true] %s39_s23 }
  0x24   :  { %s1173_s27 = scalar_lea.hbm %s1394_s0, 128 }
  0x25   :  { %p1174_p2 = scmp.ne.s32.totalorder %s1394_s0, %s1173_s27  ;;  %p1177_p3 = scmp.lt.u32.totalorder %s1173_s27, %s1394_s0 }
  0x27   :  { %p1179_p4 = pnand %p1177_p3, %p1174_p2 }
  0x29   :  { %1182 = shalt.err (!%p1179_p4)
}
  0x2a   :  { %s1183_s3 = scalar_lea.vmem %s21_s21, 128  ;;  %p1188_p6 = scmp.lt.s32.totalorder %s21_s21, %s21_s21 }
  0x2b   :  { %p1184_p5 = scmp.ne.s32.totalorder %s21_s21, %s1183_s3  ;;  %p1189_p7 = scmp.lt.s32.totalorder %s1183_s3, %s1183_s3 }
  0x2d   :  { %p1190_p8 = por %p1189_p7, %p1188_p6 }
  0x2f   :  { %p1191_p9 = pnand %p1190_p8, %p1184_p5 }
  0x31   :  { %1194 = shalt.err (!%p1191_p9)
}
  0x32   :  { %23 = dma.hbm_to_vmem [thread:$0]  %s1394_s0, 128, %s21_s21, [#allocation3]  }
  0x33   :  { %s1195_s11 = scalar_lea.hbm %s1396_s2, 768 }
  0x34   :  { %p1196_p10 = scmp.ne.s32.totalorder %s1396_s2, %s1195_s11  ;;  %p1199_p11 = scmp.lt.u32.totalorder %s1195_s11, %s1396_s2 }
  0x36   :  { %p1201_p12 = pnand %p1199_p11, %p1196_p10 }
  0x38   :  { %1204 = shalt.err (!%p1201_p12)
}
  0x39   :  { %s1205_s16 = scalar_lea.vmem %s1314_s23, 768  ;;  %p1210_p0 = scmp.lt.s32.totalorder %s1314_s23, %s1314_s23 }
  0x3a   :  { %p1206_p13 = scmp.ne.s32.totalorder %s1314_s23, %s1205_s16  ;;  %p1211_p1 = scmp.lt.s32.totalorder %s1205_s16, %s1205_s16 }
  0x3c   :  { %p1212_p2 = por %p1211_p1, %p1210_p0 }
  0x3e   :  { %p1213_p3 = pnand %p1212_p2, %p1206_p13 }
  0x40   :  { %1216 = shalt.err (!%p1213_p3)
}
  0x41   :  { %s1249_s0 = smov 256   ;;  %s1250_s17 = smov 16  }
  0x42   :  { %45 = dma.hbm_to_vmem [thread:$0]  %s1396_s2, 768, %s1314_s23, [#allocation5], %s1249_s0, %s1249_s0, %s1250_s17  }
  0x43   :  { %s1251_s19 = smov [#allocation9]   ;;  %s1217_s25 = scalar_lea.hbm %s1398_s4, 8192 }
  0x44   :  { %s61_s20 = sshll.u32 %s1251_s19, 4  ;;  %p1218_p4 = scmp.ne.s32.totalorder %s1398_s4, %s1217_s25  ;;  %s62_s20 = int_to_ptr.vmem [resolvable:$true] %s61_s20 }
  0x45   :  { %p1221_p5 = scmp.lt.u32.totalorder %s1217_s25, %s1398_s4 }
  0x47   :  { %p1223_p6 = pnand %p1221_p5, %p1218_p4 }
  0x49   :  { %1226 = shalt.err (!%p1223_p6)
}
  0x4a   :  { %s1227_s30 = scalar_lea.vmem %s62_s20, 8192  ;;  %p1232_p8 = scmp.lt.s32.totalorder %s62_s20, %s62_s20 }
  0x4b   :  { %p1228_p7 = scmp.ne.s32.totalorder %s62_s20, %s1227_s30  ;;  %p1233_p9 = scmp.lt.s32.totalorder %s1227_s30, %s1227_s30 }
  0x4d   :  { %p1234_p10 = por %p1233_p9, %p1232_p8 }
  0x4f   :  { %p1235_p11 = pnand %p1234_p10, %p1228_p7 }
  0x51   :  { %1238 = shalt.err (!%p1235_p11)
}
  0x52   :  { %s1252_s2 = smov 128   ;;  %s1253_s23 = smov 8  }
  0x53   :  { %67 = dma.hbm_to_vmem [thread:$0]  %s1398_s4, 8192, %s62_s20, [#allocation8], %s1252_s2, %s1252_s2, %s1253_s23  }
  0x54   :  { %1239 = dma.done.wait [#allocation3], 128  }
  0x55   :  { %1240 = vsyncadd [#allocation3], 4294967168 }
  0x56   :  { %1241 = dma.done.wait [#allocation5], 896  }
  0x57   :  { %1242 = vsyncadd [#allocation5], 4294966400 }
  0x58   :  { %1243 = dma.done.wait [#allocation8], 8448  }
  0x59   :  { %1244 = vsyncadd [#allocation8], 4294958848  ;;  %v1254_v0 = vmov 0   ;;  %vm242_vm0 = vcmask 1040384   ;;  %v97_v1 = vld [vmem:[#allocation7] sm:$0x77] }
  0x5a   :  { %158 = vmatprep.mubr.bf16.mxu0 %v1254_v0  ;;  %199 = vmatprep.mubr.bf16.mxu1 %v1254_v0  ;;  %vm113_vm1 = vcmask 1042432   ;;  %v98_v2 = vld [vmem:[#allocation7 + $0x8] sm:$0x77]  ;;  %v923_v4 = vcombine.high %v97_v1, %v97_v1  ;;  %v922_v6 = vcombine.low %v97_v1, %v97_v1  ;;  %vm109_vm2 = vcmask 48128   ;;  %v1025_v8 = vld [vmem:[#allocation6 + $0x4] ss:$16 sps:$4 sm:$0xff]  }
  0x5b   :  { %v89_v3 = vld [vmem:[#allocation4] sm:$0xff]  ;;  %v925_v5 = vcombine.high %v98_v2, %v98_v2  ;;  %v924_v7 = vcombine.low %v98_v2, %v98_v2  ;;  %v244_v9 = vsel %vm242_vm0, 65535, %v1254_v0  ;;  %v1023_v13 = vld [vmem:[#allocation6] ss:$16 sps:$4 sm:$0xff]   ;;  %v96_v17 = vld [vmem:[#allocation6 + $0x28] sm:$0x11] }
  0x5c   :  { %926 = vmatprep.subr.msk.bf16.mxu0 %vm113_vm1, %v923_v4  ;;  %v115_v10 = vsel %vm113_vm1, %v922_v6, 0  ;;  %v90_v12 = vpack.c.bf16 %v89_v3, %v89_v3  ;;  %v1028_v14 = vld [vmem:[#allocation6 + $0xc] ss:$16 sps:$4 sm:$0xff]   ;;  %v1026_v15 = vld [vmem:[#allocation6 + $0x8] ss:$16 sps:$4 sm:$0xff]   ;;  %v936_v20 = vcombine.low %v96_v17, %v96_v17  ;;  %v937_v21 = vcombine.high %v96_v17, %v96_v17  ;;  %v87_v26 = vld [vmem:[#allocation2] sm:$0xff] }
  0x5d   :  { %928 = vmatprep.subr.msk.bf16.mxu1 %vm113_vm1, %v925_v5  ;;  %v121_v11 = vsel %vm113_vm1, %v924_v7, 0  ;;  %127 = vmatpush1.bf16.msra.mxu0 %v115_v10  ;;  %v95_v16 = vld [vmem:[#allocation6 + $0x20] sm:$0x11]  ;;  %v88_v29 = vpack.c.bf16 %v87_v26, %v87_v26  ;;  %vm238_vm3 = vcmask 138240   ;;  %v1041_v32 = vld [vmem:[#allocation9 + $0x14] ss:$8 sps:$4 sm:$0xff]  }
  0x5e   :  { %168 = vmatpush1.bf16.msra.mxu1 %v121_v11  ;;  %257 = vmatprep.subr.bf16.mxu0 %v1025_v8  ;;  %v934_v18 = vcombine.low %v95_v16, %v95_v16  ;;  %v935_v19 = vcombine.high %v95_v16, %v95_v16  ;;  %v255_v23 = vand.u32 %v937_v21, %v244_v9  ;;  %v1035_v27 = vld [vmem:[#allocation9 + $0x4] ss:$8 sps:$4 sm:$0xff]   ;;  %v1033_v30 = vld [vmem:[#allocation9] ss:$8 sps:$4 sm:$0xff]   ;;  %v1044_v33 = vld [vmem:[#allocation9 + $0x114] ss:$8 sps:$4 sm:$0xff]  }
  0x5f   :  { %298 = vmatprep.subr.bf16.mxu1 %v1028_v14  ;;  %v252_v25 = vand.u32 %v936_v20, %v244_v9  ;;  %v1038_v28 = vld [vmem:[#allocation9 + $0x104] ss:$8 sps:$4 sm:$0xff]   ;;  %v1036_v31 = vld [vmem:[#allocation9 + $0x100] ss:$8 sps:$4 sm:$0xff]   ;;  %v1039_v34 = vld [vmem:[#allocation9 + $0x10] ss:$8 sps:$4 sm:$0xff]  }
  0x60   :  { %927 = vmatmul.mubr.msk.bf16.vlgmr.msra.gmra.mrb[0].mxu0 %vm109_vm2, %v90_v12  ;;  %v249_v22 = vand.u32 %v935_v19, %v244_v9  ;;  %v246_v24 = vand.u32 %v934_v18, %v244_v9  ;;  %v1042_v35 = vld [vmem:[#allocation9 + $0x110] ss:$8 sps:$4 sm:$0xff]   ;;  %v1047_v36 = vld [vmem:[#allocation9 + $0x24] ss:$8 sps:$4 sm:$0xff]   ;;  %v1045_v38 = vld [vmem:[#allocation9 + $0x20] ss:$8 sps:$4 sm:$0xff]  }
  0x61   :  { %929 = vmatmul.mubr.msk.bf16.vlgmr.msra.gmra.mrb[0].mxu1 %vm109_vm2, %v90_v12  ;;  %258 = vmatpush1.bf16.msra.mxu0 %v1023_v13  ;;  %v1050_v37 = vld [vmem:[#allocation9 + $0x124] ss:$8 sps:$4 sm:$0xff]   ;;  %v1048_v39 = vld [vmem:[#allocation9 + $0x120] ss:$8 sps:$4 sm:$0xff]   ;;  %v1053_v40 = vld [vmem:[#allocation9 + $0x34] ss:$8 sps:$4 sm:$0xff]  }
  0x62   :  { %299 = vmatpush1.bf16.msra.mxu1 %v1026_v15  ;;  %259 = vmatprep.subr.bf16.mxu0 %v249_v22  ;;  %v1056_v41 = vld [vmem:[#allocation9 + $0x134] ss:$8 sps:$4 sm:$0xff]   ;;  %v1051_v42 = vld [vmem:[#allocation9 + $0x30] ss:$8 sps:$4 sm:$0xff]   ;;  %v1059_v44 = vld [vmem:[#allocation9 + $0x44] ss:$8 sps:$4 sm:$0xff]  }
  0x63   :  { %289 = vmatprep.mubr.bf16.mxu0 %v1254_v0  ;;  %300 = vmatprep.subr.bf16.mxu1 %v255_v23  ;;  %v1054_v43 = vld [vmem:[#allocation9 + $0x130] ss:$8 sps:$4 sm:$0xff]   ;;  %v1062_v45 = vld [vmem:[#allocation9 + $0x144] ss:$8 sps:$4 sm:$0xff]   ;;  %v1057_v46 = vld [vmem:[#allocation9 + $0x40] ss:$8 sps:$4 sm:$0xff]  }
  0x64   :  { %330 = vmatprep.mubr.bf16.mxu1 %v1254_v0  ;;  %v1060_v47 = vld [vmem:[#allocation9 + $0x140] ss:$8 sps:$4 sm:$0xff]   ;;  %v1065_v48 = vld [vmem:[#allocation9 + $0x54] ss:$8 sps:$4 sm:$0xff]   ;;  %v1063_v50 = vld [vmem:[#allocation9 + $0x50] ss:$8 sps:$4 sm:$0xff]  }
  0x65   :  { %260 = vmatpush1.bf16.msra.mxu0 %v246_v24  ;;  %v1068_v49 = vld [vmem:[#allocation9 + $0x154] ss:$8 sps:$4 sm:$0xff]   ;;  %v1066_v51 = vld [vmem:[#allocation9 + $0x150] ss:$8 sps:$4 sm:$0xff]   ;;  %v1071_v52 = vld [vmem:[#allocation9 + $0x64] ss:$8 sps:$4 sm:$0xff]  }
  0x66   :  { %301 = vmatpush1.bf16.msra.mxu1 %v252_v25  ;;  %579 = vmatprep.subr.bf16.mxu0 %v1035_v27  ;;  %v1074_v53 = vld [vmem:[#allocation9 + $0x164] ss:$8 sps:$4 sm:$0xff]   ;;  %v1069_v54 = vld [vmem:[#allocation9 + $0x60] ss:$8 sps:$4 sm:$0xff]   ;;  %v1077_v56 = vld [vmem:[#allocation9 + $0x74] ss:$8 sps:$4 sm:$0xff]  }
  0x67   :  { %826 = vmatprep.subr.bf16.mxu1 %v1038_v28  ;;  %v1072_v55 = vld [vmem:[#allocation9 + $0x160] ss:$8 sps:$4 sm:$0xff]   ;;  %v1080_v57 = vld [vmem:[#allocation9 + $0x174] ss:$8 sps:$4 sm:$0xff]   ;;  %v1075_v58 = vld [vmem:[#allocation9 + $0x70] ss:$8 sps:$4 sm:$0xff]   ;;  %v340_v28 = vlaneseq }
  0x68   :  { %938 = vmatmul.mubr.msk.bf16.vlgmr.msra.gmra.mrb[4].mxu0 %vm238_vm3, %v88_v29  ;;  %v1078_v59 = vld [vmem:[#allocation9 + $0x170] ss:$8 sps:$4 sm:$0xff]   ;;  %v1083_v60 = vld [vmem:[#allocation9 + $0x84] ss:$8 sps:$4 sm:$0xff]   ;;  %v1081_v62 = vld [vmem:[#allocation9 + $0x80] ss:$8 sps:$4 sm:$0xff]  }
  0x69   :  { %939 = vmatmul.mubr.msk.bf16.vlgmr.msra.gmra.mrb[4].mxu1 %vm238_vm3, %v88_v29  ;;  %580 = vmatpush1.bf16.msra.mxu0 %v1033_v30  ;;  %v1086_v61 = vld [vmem:[#allocation9 + $0x184] ss:$8 sps:$4 sm:$0xff]   ;;  %v1084_v63 = vld [vmem:[#allocation9 + $0x180] ss:$8 sps:$4 sm:$0xff]   ;;  %v1089_v0 = vld [vmem:[#allocation9 + $0x94] ss:$8 sps:$4 sm:$0xff]  }
  0x6a   :  { %827 = vmatpush1.bf16.msra.mxu1 %v1036_v31  ;;  %581 = vmatprep.subr.bf16.mxu0 %v1041_v32  ;;  %v1092_v1 = vld [vmem:[#allocation9 + $0x194] ss:$8 sps:$4 sm:$0xff]   ;;  %v1087_v2 = vld [vmem:[#allocation9 + $0x90] ss:$8 sps:$4 sm:$0xff]   ;;  %v1095_v4 = vld [vmem:[#allocation9 + $0xa4] ss:$8 sps:$4 sm:$0xff]  }
  0x6b   :  { %828 = vmatprep.subr.bf16.mxu1 %v1044_v33  ;;  %v1090_v3 = vld [vmem:[#allocation9 + $0x190] ss:$8 sps:$4 sm:$0xff]   ;;  %v1098_v5 = vld [vmem:[#allocation9 + $0x1a4] ss:$8 sps:$4 sm:$0xff]   ;;  %v1093_v6 = vld [vmem:[#allocation9 + $0xa0] ss:$8 sps:$4 sm:$0xff]  }
  0x6c   :  { %v1096_v7 = vld [vmem:[#allocation9 + $0x1a0] ss:$8 sps:$4 sm:$0xff]   ;;  %v1101_v8 = vld [vmem:[#allocation9 + $0xb4] ss:$8 sps:$4 sm:$0xff]   ;;  %v1099_v10 = vld [vmem:[#allocation9 + $0xb0] ss:$8 sps:$4 sm:$0xff]  }
  0x6d   :  { %582 = vmatpush1.bf16.msra.mxu0 %v1039_v34  ;;  %v1104_v9 = vld [vmem:[#allocation9 + $0x1b4] ss:$8 sps:$4 sm:$0xff]   ;;  %v1102_v11 = vld [vmem:[#allocation9 + $0x1b0] ss:$8 sps:$4 sm:$0xff]   ;;  %v1107_v12 = vld [vmem:[#allocation9 + $0xc4] ss:$8 sps:$4 sm:$0xff]  }
  0x6e   :  { %829 = vmatpush1.bf16.msra.mxu1 %v1042_v35  ;;  %583 = vmatprep.subr.bf16.mxu0 %v1047_v36  ;;  %v1110_v13 = vld [vmem:[#allocation9 + $0x1c4] ss:$8 sps:$4 sm:$0xff]   ;;  %v1105_v14 = vld [vmem:[#allocation9 + $0xc0] ss:$8 sps:$4 sm:$0xff]   ;;  %v1113_v16 = vld [vmem:[#allocation9 + $0xd4] ss:$8 sps:$4 sm:$0xff]  }
  0x6f   :  { %830 = vmatprep.subr.bf16.mxu1 %v1050_v37  ;;  %v1108_v15 = vld [vmem:[#allocation9 + $0x1c0] ss:$8 sps:$4 sm:$0xff]   ;;  %v1111_v17 = vld [vmem:[#allocation9 + $0xd0] ss:$8 sps:$4 sm:$0xff]   ;;  %v1116_v19 = vld [vmem:[#allocation9 + $0x1d4] ss:$8 sps:$4 sm:$0xff]  }
  0x70   :  { %v1114_v18 = vld [vmem:[#allocation9 + $0x1d0] ss:$8 sps:$4 sm:$0xff]   ;;  %v1119_v20 = vld [vmem:[#allocation9 + $0xe4] ss:$8 sps:$4 sm:$0xff]   ;;  %v1117_v22 = vld [vmem:[#allocation9 + $0xe0] ss:$8 sps:$4 sm:$0xff]  }
  0x71   :  { %584 = vmatpush1.bf16.msra.mxu0 %v1045_v38  ;;  %v1122_v21 = vld [vmem:[#allocation9 + $0x1e4] ss:$8 sps:$4 sm:$0xff]   ;;  %v1120_v23 = vld [vmem:[#allocation9 + $0x1e0] ss:$8 sps:$4 sm:$0xff]   ;;  %v1125_v24 = vld [vmem:[#allocation9 + $0xf4] ss:$8 sps:$4 sm:$0xff]  }
  0x72   :  { %831 = vmatpush1.bf16.msra.mxu1 %v1048_v39  ;;  %585 = vmatprep.subr.bf16.mxu0 %v1053_v40  ;;  %v1128_v25 = vld [vmem:[#allocation9 + $0x1f4] ss:$8 sps:$4 sm:$0xff]   ;;  %v1123_v26 = vld [vmem:[#allocation9 + $0xf0] ss:$8 sps:$4 sm:$0xff]   ;;  %v341_v29 = vshrl.u32 %v340_v28, 7  ;;  %vm906_vm4 = vcmask 7168  }
  0x73   :  { %832 = vmatprep.subr.bf16.mxu1 %v1056_v41  ;;  %v1126_v27 = vld [vmem:[#allocation9 + $0x1f0] ss:$8 sps:$4 sm:$0xff]   ;;  %v86_v40 = vld [vmem:[%s1399_s5] ss:$4 sm:$0xf]  ;;  %vm913_vm5 = vcmask 15360  }
  0x74   :  { %v1359_v38 = vsub.s32 0, %v341_v29  ;;  %v350_v39 = vsub.s32 2, %v341_v29  ;;  %v1364_v41 = vsub.s32 1, %v341_v29 }
  0x75   :  { %586 = vmatpush1.bf16.msra.mxu0 %v1051_v42  ;;  %v354_v42 = vsub.s32 3, %v341_v29 }
  0x76   :  { %833 = vmatpush1.bf16.msra.mxu1 %v1054_v43  ;;  %587 = vmatprep.subr.bf16.mxu0 %v1059_v44  ;;  %v343_v43 = vrot.slane %v86_v40, %v1359_v38  ;;  %v351_v44 = vrot.slane %v86_v40, %v350_v39 }
  0x77   :  { %834 = vmatprep.subr.bf16.mxu1 %v1062_v45 }
  0x79   :  { %588 = vmatpush1.bf16.msra.mxu0 %v1057_v46 }
  0x7a   :  { %835 = vmatpush1.bf16.msra.mxu1 %v1060_v47  ;;  %589 = vmatprep.subr.bf16.mxu0 %v1065_v48  ;;  %v347_v47 = vrot.slane %v86_v40, %v1364_v41  ;;  %v355_v48 = vrot.slane %v86_v40, %v354_v42 }
  0x7b   :  { %836 = vmatprep.subr.bf16.mxu1 %v1068_v49 }
  0x7d   :  { %590 = vmatpush1.bf16.msra.mxu0 %v1063_v50 }
  0x7e   :  { %837 = vmatpush1.bf16.msra.mxu1 %v1066_v51  ;;  %591 = vmatprep.subr.bf16.mxu0 %v1071_v52 }
  0x7f   :  { %838 = vmatprep.subr.bf16.mxu1 %v1074_v53 }
  0x81   :  { %592 = vmatpush1.bf16.msra.mxu0 %v1069_v54 }
  0x82   :  { %839 = vmatpush1.bf16.msra.mxu1 %v1072_v55  ;;  %593 = vmatprep.subr.bf16.mxu0 %v1077_v56 }
  0x83   :  { %840 = vmatprep.subr.bf16.mxu1 %v1080_v57 }
  0x85   :  { %594 = vmatpush1.bf16.msra.mxu0 %v1075_v58 }
  0x86   :  { %841 = vmatpush1.bf16.msra.mxu1 %v1078_v59  ;;  %595 = vmatprep.subr.bf16.mxu0 %v1083_v60 }
  0x87   :  { %842 = vmatprep.subr.bf16.mxu1 %v1086_v61 }
  0x89   :  { %596 = vmatpush1.bf16.msra.mxu0 %v1081_v62 }
  0x8a   :  { %843 = vmatpush1.bf16.msra.mxu1 %v1084_v63  ;;  %597 = vmatprep.subr.bf16.mxu0 %v1089_v0 }
  0x8b   :  { %844 = vmatprep.subr.bf16.mxu1 %v1092_v1 }
  0x8d   :  { %598 = vmatpush1.bf16.msra.mxu0 %v1087_v2 }
  0x8e   :  { %845 = vmatpush1.bf16.msra.mxu1 %v1090_v3  ;;  %599 = vmatprep.subr.bf16.mxu0 %v1095_v4 }
  0x8f   :  { %846 = vmatprep.subr.bf16.mxu1 %v1098_v5 }
  0x91   :  { %600 = vmatpush1.bf16.msra.mxu0 %v1093_v6 }
  0x92   :  { %847 = vmatpush1.bf16.msra.mxu1 %v1096_v7  ;;  %601 = vmatprep.subr.bf16.mxu0 %v1101_v8  ;;  %v940_v7 = vld [vmem:[%s1399_s5 + $0x1] ss:$4 sm:$0x3]  ;;  %v941_v8 = vld [vmem:[%s1399_s5 + $0x9] ss:$4 sm:$0x3] }
  0x93   :  { %848 = vmatprep.subr.bf16.mxu1 %v1104_v9  ;;  %v412_v9 = vrot.slane %v940_v7, %v1359_v38 }
  0x95   :  { %602 = vmatpush1.bf16.msra.mxu0 %v1099_v10  ;;  %v659_v10 = vrot.slane %v941_v8, %v1359_v38 }
  0x96   :  { %849 = vmatpush1.bf16.msra.mxu1 %v1102_v11  ;;  %603 = vmatprep.subr.bf16.mxu0 %v1107_v12  ;;  %v1007_v11 = vld [vmem:[%s1399_s5 + $0xa] ss:$4 sm:$0x3]  ;;  %v416_v12 = vrot.slane %v940_v7, %v1364_v41 }
  0x97   :  { %850 = vmatprep.subr.bf16.mxu1 %v1110_v13  ;;  %v663_v13 = vrot.slane %v941_v8, %v1364_v41 }
  0x99   :  { %604 = vmatpush1.bf16.msra.mxu0 %v1105_v14  ;;  %v1006_v14 = vld [vmem:[%s1399_s5 + $0x2] ss:$4 sm:$0x3] }
  0x9a   :  { %851 = vmatpush1.bf16.msra.mxu1 %v1108_v15  ;;  %605 = vmatprep.subr.bf16.mxu0 %v1113_v16  ;;  %v881_v28 = vrot.slane %v1006_v14, %v1364_v41 }
  0x9b   :  { %852 = vmatprep.subr.bf16.mxu1 %v1116_v19  ;;  %v893_v19 = vrot.slane %v1007_v11, %v1359_v38 }
  0x9d   :  { %606 = vmatpush1.bf16.msra.mxu0 %v1111_v17 }
  0x9e   :  { %853 = vmatpush1.bf16.msra.mxu1 %v1114_v18  ;;  %607 = vmatprep.subr.bf16.mxu0 %v1119_v20 }
  0x9f   :  { %854 = vmatprep.subr.bf16.mxu1 %v1122_v21 }
  0xa1   :  { %608 = vmatpush1.bf16.msra.mxu0 %v1117_v22  ;;  %v877_v22 = vrot.slane %v1006_v14, %v1359_v38 }
  0xa2   :  { %855 = vmatpush1.bf16.msra.mxu1 %v1120_v23  ;;  %609 = vmatprep.subr.bf16.mxu0 %v1125_v24 }
  0xa3   :  { %856 = vmatprep.subr.bf16.mxu1 %v1128_v25  ;;  %v897_v25 = vrot.slane %v1007_v11, %v1364_v41  ;;  %v1008_v41 = vld [vmem:[%s1399_s5 + $0x3] ss:$0 sm:$0xff] }
  0xa5   :  { %610 = vmatpush1.bf16.msra.mxu0 %v1123_v26 }
  0xa6   :  { %857 = vmatpush1.bf16.msra.mxu1 %v1126_v27 }
 0x133   :  { %v160_v30 = vpop.f32.mrb[0].mxu0 }
 0x134   :  { %v201_v31 = vpop.f32.mrb[0].mxu1  ;;  %v162_v32 = vpop.f32.mrb[1].mxu0 }
 0x135   :  { %v203_v33 = vpop.f32.mrb[1].mxu1  ;;  %v164_v34 = vpop.f32.mrb[2].mxu0 }
 0x136   :  { %v205_v35 = vpop.f32.mrb[2].mxu1  ;;  %v165_v36 = vpop.f32.mrb[3].mxu0 }
 0x137   :  { %v206_v37 = vpop.f32.mrb[3].mxu1 }
 0x13b   :  { %v291_v45 = vpop.f32.mrb[4].mxu0 }
 0x13c   :  { %v332_v46 = vpop.f32.mrb[4].mxu1  ;;  %v292_v49 = vadd.f32 %v291_v45, %v160_v30  ;;  %v293_v51 = vpop.f32.mrb[5].mxu0 }
 0x13d   :  { %v333_v50 = vadd.f32 %v332_v46, %v201_v31  ;;  %v334_v52 = vpop.f32.mrb[5].mxu1  ;;  %v294_v53 = vadd.f32 %v293_v51, %v162_v32  ;;  %v295_v55 = vpop.f32.mrb[6].mxu0 }
 0x13e   :  { %v335_v54 = vadd.f32 %v334_v52, %v203_v33  ;;  %v336_v56 = vpop.f32.mrb[6].mxu1  ;;  %v360_v57 = vadd.f32 %v343_v43, %v292_v49  ;;  %v296_v59 = vpop.f32.mrb[7].mxu0 }
 0x13f   :  { %v362_v58 = vadd.f32 %v351_v44, %v333_v50  ;;  %v337_v60 = vpop.f32.mrb[7].mxu1  ;;  %v361_v61 = vadd.f32 %v347_v47, %v294_v53 }
 0x140   :  { %v363_v62 = vadd.f32 %v355_v48, %v335_v54  ;;  %v364_v63 = vmax.f32 %v360_v57, 0.0 }
 0x141   :  { %v366_v0 = vmax.f32 %v362_v58, 0.0  ;;  %v365_v1 = vmax.f32 %v361_v61, 0.0 }
 0x142   :  { %v367_v2 = vmax.f32 %v363_v62, 0.0  ;;  %v368_v5 = vpack.c.bf16 %v364_v63, %v364_v63 }
 0x143   :  { %v369_v3 = vpack.c.bf16 %v365_v1, %v365_v1  ;;  %v370_v6 = vpack.c.bf16 %v366_v0, %v366_v0 }
 0x144   :  { %v371_v4 = vpack.c.bf16 %v367_v2, %v367_v2 }
 0x145   :  { %611 = vmatprep.mubr.bf16.mxu0 %v369_v3 }
 0x146   :  { %858 = vmatprep.mubr.bf16.mxu1 %v371_v4  ;;  %612 = vmatmul.mubr.bf16.vlgmr.msra.gmra.mrb[8].mxu0 %v368_v5 }
 0x147   :  { %859 = vmatmul.mubr.bf16.vlgmr.msra.gmra.mrb[8].mxu1 %v370_v6 }
 0x219   :  { %v613_v15 = vpop.f32.mrb[8].mxu0 }
 0x21a   :  { %v860_v16 = vpop.f32.mrb[8].mxu1  ;;  %v614_v17 = vadd.f32 %v613_v15, %v412_v9  ;;  %v615_v20 = vpop.f32.mrb[9].mxu0 }
 0x21b   :  { %v861_v18 = vadd.f32 %v860_v16, %v659_v10  ;;  %v862_v21 = vpop.f32.mrb[9].mxu1  ;;  %v616_v23 = vadd.f32 %v615_v20, %v416_v12  ;;  %v617_v26 = vpop.f32.mrb[10].mxu0 }
 0x21c   :  { %v863_v24 = vadd.f32 %v862_v21, %v663_v13  ;;  %v864_v27 = vpop.f32.mrb[10].mxu1  ;;  %v620_v29 = vmax.f32 %v614_v17, 0.0  ;;  %v618_v31 = vpop.f32.mrb[11].mxu0 }
 0x21d   :  { %v867_v30 = vmax.f32 %v861_v18, 0.0  ;;  %v865_v32 = vpop.f32.mrb[11].mxu1  ;;  %v621_v33 = vmax.f32 %v616_v23, 0.0 }
 0x21e   :  { %v868_v34 = vmax.f32 %v863_v24, 0.0  ;;  %v884_v36 = vmul.f32 %v877_v22, %v620_v29 }
 0x21f   :  { %v900_v35 = vmul.f32 %v893_v19, %v867_v30  ;;  %v885_v39 = vmul.f32 %v881_v28, %v621_v33 }
 0x220   :  { %v901_v37 = vmul.f32 %v897_v25, %v868_v34 }
 0x221   :  { %v886_v40 = vadd.f32 %v885_v39, %v884_v36 }
 0x222   :  { %v902_v38 = vadd.f32 %v901_v37, %v900_v35 }
 0x223   :  { %887 = vadd.xlane.f32.xlu0 %v886_v40 }
 0x227   :  { %903 = vadd.xlane.f32.xlu0 %v902_v38 }
 0x2b0   :  { %v888_v42 = vpop.xlane.xlu0 %887 }
 0x2b4   :  { %v904_v43 = vpop.xlane.xlu0 %903 }
 0x2b5   :  { %v907_v44 = vsel %vm906_vm4, %v888_v42, %v904_v43 }
 0x2b6   :  { %v912_v45 = vadd.f32 %v1008_v41, %v907_v44 }
 0x2b8   :  { %914 = vst.msk [vmem:[%s1400_s6] sm:$0xff] %vm913_vm5, %v912_v45 }
 0x2b9   :  { %919 = vsyncpa [#allocation3], 1 }
 0x2ba   :  { %920 = vsyncpa [#allocation5], 1 }
 0x2bb   :  { %921 = vsyncpa [#allocation8], 1 }

</bundles_post_ra>
